<compile_context>
chip_gen: v7x
topology: tpu7x:2x2x1
jax: 0.10.0
libtpu: 0.0.40
codegen_flags: <defaults>
</compile_context>

<pallas_src>
import functools

import jax
import jax.numpy as jnp
from jax.experimental import pallas as pl
from jax.experimental.pallas import tpu as pltpu

EPS = 1e-5


def _round_up(x, m):
    return ((x + m - 1) // m) * m


def _vmem_capacity_bytes():
    """Physical per-core VMEM, generation-aware; conservative fallback."""
    try:
        info = pltpu.get_tpu_info()
        cap = getattr(info, "vmem_capacity_bytes", None)
        if cap:
            return int(cap)
    except Exception:
        pass
    return 64 << 20  # v7x per-TensorCore VMEM (smallest of current gens)


def _ln_linear_kernel(x_ref, g_ref, b_ref, w_ref, wb_ref, o_ref, y_ref, *,
                      d_real):
    """Grid = (row tile i, output-column tile j), j innermost.

    j == 0 : LayerNorm the (tn, Dp) row tile once into a bf16 VMEM scratch.
    every j: scratch @ W^T[:, j-tile] + bias[j-tile] -> output column tile.
    """
    j = pl.program_id(1)

    @pl.when(j == 0)
    def _():
        x = x_ref[...].astype(jnp.float32)                       # (tn, Dp)
        inv_d = 1.0 / d_real
        # Padded feature lanes hold zeros, so the plain sums only see the real
        # `dim` entries; divide by d_real explicitly.  var = E[x^2] - mean^2
        # avoids the iota/where mask and a second pass over the tile.
        mean = jnp.sum(x, axis=-1, keepdims=True) * inv_d
        var = jnp.sum(x * x, axis=-1, keepdims=True) * inv_d - mean * mean
        inv = jax.lax.rsqrt(jnp.maximum(var, 0.0) + EPS)
        y = (x - mean) * inv * g_ref[...].astype(jnp.float32) \
            + b_ref[...].astype(jnp.float32)
        y_ref[...] = y.astype(jnp.bfloat16)                      # MXU-ready

    out = jnp.dot(y_ref[...], w_ref[...], preferred_element_type=jnp.float32)
    o_ref[...] = (out + wb_ref[...].astype(jnp.float32)).astype(o_ref.dtype)


def prepare_ln_linear_params(gamma, beta, w_t, w_bias):
    """Pad params to a lane-dense (multiple-of-128) feature axis and convert
    the Linear weight to bf16 ONCE, outside the per-call hot path.

    w_t is the Linear weight already transposed to (D, D): kernel computes
    y @ w_t + w_bias.
    """
    D = gamma.shape[0]
    Dp = _round_up(D, 128)
    pad = (0, Dp - D)
    if Dp != D:
        g2 = jnp.pad(gamma.astype(jnp.float32), pad)
        b2 = jnp.pad(beta.astype(jnp.float32), pad)
        wb2 = jnp.pad(w_bias.astype(jnp.float32), pad)
        w2 = jnp.pad(w_t, (pad, pad))
    else:
        g2, b2, wb2, w2 = (gamma.astype(jnp.float32),
                           beta.astype(jnp.float32),
                           w_bias.astype(jnp.float32), w_t)
    return (g2.reshape(1, Dp), b2.reshape(1, Dp),
            w2.astype(jnp.bfloat16), wb2.reshape(1, Dp))


def layer_normalize(x, params, *, out_dtype=None):
    """y = Linear(LayerNorm(x)); x: (B, S, D), params from prepare_...()."""
    g2, b2, w2, wb2 = params
    B, S, D = x.shape
    N = B * S
    Dp = w2.shape[0]
    # On v5e (store-slot / HBM-BW bound) pass out_dtype=jnp.bfloat16 to halve
    # writeback if downstream tolerates it; default keeps x.dtype semantics.
    out_dtype = out_dtype or x.dtype
    x_item = jnp.dtype(x.dtype).itemsize
    out_item = jnp.dtype(out_dtype).itemsize

    # ---- tile selection, sized against physical VMEM with headroom ---------
    vmem_cap = _vmem_capacity_bytes()
    budget = int(0.72 * vmem_cap)

    def footprint(tn, tc):
        return (2 * tn * Dp * x_item       # x tiles (double buffered)
                + 2 * tn * tc * out_item   # out tiles (double buffered)
                + 2 * Dp * tc * 2          # bf16 weight column tiles (x2)
                + tn * Dp * 2              # bf16 normalized-row scratch
                + 4 * tn * Dp * 4          # live f32 LN temporaries
                + tn * tc * 4              # f32 matmul accumulator
                + 8 * Dp * 4)              # gamma / beta / linear bias

    tn = _round_up(min(512 if Dp <= 2048 else 256, max(N, 8)), 8)
    tc = Dp
    while footprint(tn, tc) > budget and tc > 128:
        tc = _round_up(max(128, tc // 2), 128)
    while footprint(tn, tc) > budget and tn > 8:
        tn = _round_up(max(8, tn // 2), 8)

    grid = (pl.cdiv(N, tn), pl.cdiv(Dp, tc))

    # ---- avoid extra HBM passes: no row padding, no feature padding if the
    # feature axis is already lane-dense (multiple of 128). --------------------
    x2 = x.reshape(N, D)
    if Dp != D:
        x2 = jnp.pad(x2, ((0, 0), (0, Dp - D)))
    # Rows are never padded: the ragged last row tile uses masked stores.

    vmem_limit = int(min(max(32 << 20, int(1.3 * footprint(tn, tc))),
                         int(0.9 * vmem_cap)))

    cost = pl.CostEstimate(
        flops=2 * N * Dp * Dp + 8 * N * Dp,
        transcendentals=N,                                   # one rsqrt / row
        bytes_accessed=N * Dp * (x_item + out_item) + Dp * Dp * 2)

    kernel = functools.partial(_ln_linear_kernel, d_real=D)

    out2 = pl.pallas_call(
        kernel,
        out_shape=jax.ShapeDtypeStruct((N, Dp), out_dtype),
        grid_spec=pltpu.PrefetchScalarGridSpec(
            num_scalar_prefetch=0,
            grid=grid,
            in_specs=[
                pl.BlockSpec((tn, Dp), lambda i, j: (i, 0)),   # x rows (reused over j)
                pl.BlockSpec((1, Dp), lambda i, j: (0, 0)),    # gamma
                pl.BlockSpec((1, Dp), lambda i, j: (0, 0)),    # beta
                pl.BlockSpec((Dp, tc), lambda i, j: (0, j)),   # W^T column tile (bf16)
                pl.BlockSpec((1, tc), lambda i, j: (0, j)),    # linear bias tile
            ],
            out_specs=pl.BlockSpec((tn, tc), lambda i, j: (i, j)),
            scratch_shapes=[pltpu.VMEM((tn, Dp), jnp.bfloat16)],
        ),
        compiler_params=pltpu.CompilerParams(
            # Rows shard across TensorCores on v7x; the column axis carries the
            # LN-scratch dependency (j==0 writes it), so it stays "arbitrary".
            dimension_semantics=("parallel", "arbitrary"),
            vmem_limit_bytes=vmem_limit,
        ),
        cost_estimate=cost,
    )(x2, g2, b2, w2, wb2)

    if Dp != D:
        out2 = out2[:, :D]
    return out2.reshape(B, S, D)


def _reference(x, gamma, beta, w_t, w_bias):
    xf = x.astype(jnp.float32)
    mean = jnp.mean(xf, axis=-1, keepdims=True)
    var = jnp.mean((xf - mean) ** 2, axis=-1, keepdims=True)
    y = (xf - mean) * jax.lax.rsqrt(var + EPS) * gamma + beta
    return (y @ w_t + w_bias).astype(x.dtype)


if __name__ == "__main__":
    key = jax.random.PRNGKey(0)
    B, S, D = 2, 8, 32  # batch=2, seq=8, hidden dim=32

    kx, kw, kb = jax.random.split(key, 3)
    x = jax.random.normal(kx, (B, S, D), dtype=jnp.float32)

    # nn.LayerNorm(dim) default init: weight=1, bias=0.
    gamma = jnp.ones((D,), dtype=jnp.float32)
    beta = jnp.zeros((D,), dtype=jnp.float32)

    # fn = Linear(D, D): deterministic init (kaiming-uniform-ish scale).
    bound = 1.0 / (D ** 0.5)
    w = jax.random.uniform(kw, (D, D), minval=-bound, maxval=bound,
                           dtype=jnp.float32)
    w_bias = jax.random.uniform(kb, (D,), minval=-bound, maxval=bound,
                                dtype=jnp.float32)
    w_t = w.T  # kernel computes y @ W^T directly

    # Pad/convert params once (hoisted out of the per-call hot path).
    params = prepare_ln_linear_params(gamma, beta, w_t, w_bias)
    fwd = jax.jit(lambda xx: layer_normalize(xx, params))

    out = jax.block_until_ready(fwd(x))

    ref = _reference(x, gamma, beta, w_t, w_bias)
    assert out.shape == (B, S, D)
    # bf16 MXU feed -> looser tolerance than the pure-f32 reference matmul.
    max_err = jnp.max(jnp.abs(out - ref))
    assert jnp.allclose(out, ref, atol=5e-2, rtol=5e-2), (
        f"mismatch vs reference; max abs err = {max_err:.3e}")

    print("KERNEL_OK")
</pallas_src>

<mosaic_0001>
module attributes {stable_mosaic.version = 11 : i64} {
  func.func @_ln_linear_kernel(%arg0: i32, %arg1: i32, %arg2: memref<16x128xf32, #tpu.memory_space<vmem>>, %arg3: memref<1x128xf32, #tpu.memory_space<vmem>>, %arg4: memref<1x128xf32, #tpu.memory_space<vmem>>, %arg5: memref<128x128xbf16, #tpu.memory_space<vmem>>, %arg6: memref<1x128xf32, #tpu.memory_space<vmem>>, %arg7: memref<16x128xf32, #tpu.memory_space<vmem>>, %arg8: memref<16x128xbf16, #tpu.memory_space<vmem>>) attributes {dimension_semantics = [#tpu.dimension_semantics<parallel>, #tpu.dimension_semantics<arbitrary>], iteration_bounds = array<i64: 1, 1>, scalar_prefetch = 0 : i64, scratch_operands = 1 : i64, tpu.core_type = #tpu.core_type<tc>, window_params = [{transform_indices = @transform_0, window_bounds = array<i64: 16, 128>}, {pipeline_mode = #tpu.pipeline_mode<synchronous>, transform_indices = @transform_1, window_bounds = array<i64: 1, 128>}, {pipeline_mode = #tpu.pipeline_mode<synchronous>, transform_indices = @transform_2, window_bounds = array<i64: 1, 128>}, {transform_indices = @transform_3, window_bounds = array<i64: 128, 128>}, {transform_indices = @transform_4, window_bounds = array<i64: 1, 128>}, {transform_indices = @transform_5, window_bounds = array<i64: 16, 128>}]} {
    %c0_i32 = arith.constant 0 : i32
    %0 = arith.cmpi eq, %arg1, %c0_i32 : i32
    %1 = arith.extui %0 : i1 to i32
    %c0_i32_0 = arith.constant 0 : i32
    %2 = arith.cmpi ne, %1, %c0_i32_0 : i32
    scf.if %2 {
      %c0_8 = arith.constant 0 : index
      %c0_9 = arith.constant 0 : index
      %10 = vector.load %arg2[%c0_8, %c0_9] : memref<16x128xf32, #tpu.memory_space<vmem>>, vector<16x128xf32>
      %cst_10 = arith.constant dense<0.000000e+00> : vector<16xf32>
      %11 = vector.multi_reduction <add>, %10, %cst_10 [1] : vector<16x128xf32> to vector<16xf32>
      %12 = vector.shape_cast %11 : vector<16xf32> to vector<16x1xf32>
      %cst_11 = arith.constant 3.125000e-02 : f32
      %13 = vector.broadcast %cst_11 : f32 to vector<16x1xf32>
      %14 = arith.mulf %12, %13 : vector<16x1xf32>
      %15 = arith.mulf %10, %10 : vector<16x128xf32>
      %cst_12 = arith.constant dense<0.000000e+00> : vector<16xf32>
      %16 = vector.multi_reduction <add>, %15, %cst_12 [1] : vector<16x128xf32> to vector<16xf32>
      %17 = vector.shape_cast %16 : vector<16xf32> to vector<16x1xf32>
      %cst_13 = arith.constant 3.125000e-02 : f32
      %18 = vector.broadcast %cst_13 : f32 to vector<16x1xf32>
      %19 = arith.mulf %17, %18 : vector<16x1xf32>
      %20 = arith.mulf %14, %14 : vector<16x1xf32>
      %21 = arith.subf %19, %20 : vector<16x1xf32>
      %cst_14 = arith.constant 0.000000e+00 : f32
      %22 = vector.broadcast %cst_14 : f32 to vector<16x1xf32>
      %23 = arith.maximumf %21, %22 : vector<16x1xf32>
      %cst_15 = arith.constant 9.99999974E-6 : f32
      %24 = vector.broadcast %cst_15 : f32 to vector<16x1xf32>
      %25 = arith.addf %23, %24 : vector<16x1xf32>
      %26 = math.rsqrt %25 : vector<16x1xf32>
      %27 = vector.broadcast %14 : vector<16x1xf32> to vector<16x128xf32>
      %28 = arith.subf %10, %27 : vector<16x128xf32>
      %29 = vector.broadcast %26 : vector<16x1xf32> to vector<16x128xf32>
      %30 = arith.mulf %28, %29 : vector<16x128xf32>
      %c0_16 = arith.constant 0 : index
      %c0_17 = arith.constant 0 : index
      %31 = vector.load %arg3[%c0_16, %c0_17] : memref<1x128xf32, #tpu.memory_space<vmem>>, vector<1x128xf32>
      %32 = vector.broadcast %31 : vector<1x128xf32> to vector<16x128xf32>
      %33 = arith.mulf %30, %32 : vector<16x128xf32>
      %c0_18 = arith.constant 0 : index
      %c0_19 = arith.constant 0 : index
      %34 = vector.load %arg4[%c0_18, %c0_19] : memref<1x128xf32, #tpu.memory_space<vmem>>, vector<1x128xf32>
      %35 = vector.broadcast %34 : vector<1x128xf32> to vector<16x128xf32>
      %36 = arith.addf %33, %35 : vector<16x128xf32>
      %37 = arith.truncf %36 : vector<16x128xf32> to vector<16x128xbf16>
      %c0_20 = arith.constant 0 : index
      %c0_21 = arith.constant 0 : index
      %38 = vector.load %arg8[%c0_20, %c0_21] : memref<16x128xbf16, #tpu.memory_space<vmem>>, vector<16x128xbf16>
      tpu.vector_store %arg8[%c0_20, %c0_21], %37 {strides = array<i32>} : memref<16x128xbf16, #tpu.memory_space<vmem>>, vector<16x128xbf16>,
    } else {
    }
    %c0 = arith.constant 0 : index
    %c0_1 = arith.constant 0 : index
    %3 = vector.load %arg8[%c0, %c0_1] : memref<16x128xbf16, #tpu.memory_space<vmem>>, vector<16x128xbf16>
    %c0_2 = arith.constant 0 : index
    %c0_3 = arith.constant 0 : index
    %4 = vector.load %arg5[%c0_2, %c0_3] : memref<128x128xbf16, #tpu.memory_space<vmem>>, vector<128x128xbf16>
    %cst = arith.constant dense<0.000000e+00> : vector<16x128xf32>
    %5 = tpu.matmul %3, %4, %cst {dimension_numbers = #tpu.dot_dimension_numbers<[1], [0], [0], [1], [0, 0, 1, 1], [], []>} : vector<16x128xbf16>, vector<128x128xbf16>, vector<16x128xf32> -> vector<16x128xf32>
    %c0_4 = arith.constant 0 : index
    %c0_5 = arith.constant 0 : index
    %6 = vector.load %arg6[%c0_4, %c0_5] : memref<1x128xf32, #tpu.memory_space<vmem>>, vector<1x128xf32>
    %7 = vector.broadcast %6 : vector<1x128xf32> to vector<16x128xf32>
    %8 = arith.addf %5, %7 : vector<16x128xf32>
    %c0_6 = arith.constant 0 : index
    %c0_7 = arith.constant 0 : index
    %9 = vector.load %arg7[%c0_6, %c0_7] : memref<16x128xf32, #tpu.memory_space<vmem>>, vector<16x128xf32>
    tpu.vector_store %arg7[%c0_6, %c0_7], %8 {strides = array<i32>} : memref<16x128xf32, #tpu.memory_space<vmem>>, vector<16x128xf32>,
    return
  }
  func.func @transform_0(%arg0: i32, %arg1: i32) -> (i32, i32) {
    %c0_i32 = arith.constant 0 : i32
    %c0_i32_0 = arith.constant 0 : i32
    return %arg0, %c0_i32 : i32, i32
  }
  func.func @transform_1(%arg0: i32, %arg1: i32) -> (i32, i32) {
    %c0_i32 = arith.constant 0 : i32
    %c0_i32_0 = arith.constant 0 : i32
    %c0_i32_1 = arith.constant 0 : i32
    return %c0_i32, %c0_i32_0 : i32, i32
  }
  func.func @transform_2(%arg0: i32, %arg1: i32) -> (i32, i32) {
    %c0_i32 = arith.constant 0 : i32
    %c0_i32_0 = arith.constant 0 : i32
    %c0_i32_1 = arith.constant 0 : i32
    return %c0_i32, %c0_i32_0 : i32, i32
  }
  func.func @transform_3(%arg0: i32, %arg1: i32) -> (i32, i32) {
    %c0_i32 = arith.constant 0 : i32
    %c0_i32_0 = arith.constant 0 : i32
    return %c0_i32, %arg1 : i32, i32
  }
  func.func @transform_4(%arg0: i32, %arg1: i32) -> (i32, i32) {
    %c0_i32 = arith.constant 0 : i32
    %c0_i32_0 = arith.constant 0 : i32
    return %c0_i32, %arg1 : i32, i32
  }
  func.func @transform_5(%arg0: i32, %arg1: i32) -> (i32, i32) {
    %c0_i32 = arith.constant 0 : i32
    return %arg0, %arg1 : i32, i32
  }
}

</mosaic_0001>

<bundles_post_ra>
// kernel: _lambda_.1
= control target key start
LH: loop header
LB: loop body
LE: loop exit
PB: predicated region body
PF: predicated region fallthrough
CT: control target
= control target key end

     0   :  { %10 = vsyncpa [#allocation4], 0  ;;  %s290_s18 = smov [#allocation3]   ;;  %s358_s0 = inlined_call_operand.vmem [shape: f32[16,128], index: 0, kind: input, shape index: {}]   ;;  %s359_s1 = inlined_call_operand.vmem [shape: f32[1,128], index: 1, kind: input, shape index: {}]   ;;  %s360_s2 = inlined_call_operand.vmem [shape: f32[1,128], index: 2, kind: input, shape index: {}]   ;;  %s361_s3 = inlined_call_operand.hbm [shape: bf16[128,128], index: 3, kind: input, shape index: {}]   ;;  %s362_s4 = inlined_call_operand.vmem [shape: f32[1,128], index: 4, kind: input, shape index: {}]   ;;  %s363_s5 = inlined_call_operand.vmem [shape: f32[16,128], index: 5, kind: output, shape index: {}]  }
   0x1   :  { %s22_s19 = sshll.u32 %s290_s18, 4  ;;  %s266_s22 = scalar_lea.hbm %s361_s3, 1024  ;;  %s23_s19 = int_to_ptr.vmem [resolvable:$true] %s22_s19 }
   0x2   :  { %p267_p0 = scmp.ne.s32.totalorder %s361_s3, %s266_s22  ;;  %p270_p1 = scmp.lt.u32.totalorder %s266_s22, %s361_s3 }
   0x4   :  { %p272_p2 = pnand %p270_p1, %p267_p0 }
   0x6   :  { %275 = shalt.err (!%p272_p2)
}
   0x7   :  { %s276_s27 = scalar_lea.vmem %s23_s19, 1024  ;;  %p281_p4 = scmp.lt.s32.totalorder %s23_s19, %s23_s19 }
   0x8   :  { %p277_p3 = scmp.ne.s32.totalorder %s23_s19, %s276_s27  ;;  %p282_p5 = scmp.lt.s32.totalorder %s276_s27, %s276_s27 }
   0xa   :  { %p283_p6 = por %p282_p5, %p281_p4 }
   0xc   :  { %p284_p7 = pnand %p283_p6, %p277_p3 }
   0xe   :  { %287 = shalt.err (!%p284_p7)
}
   0xf   :  { %s291_s28 = smov 64   ;;  %s292_s29 = smov 4  }
  0x10   :  { %28 = dma.hbm_to_vmem [thread:$0]  %s361_s3, 1024, %s23_s19, [#allocation4], %s291_s28, %s291_s28, %s292_s29  }
  0x11   :  { %288 = dma.done.wait [#allocation4], 1024  }
  0x12   :  { %289 = vsyncadd [#allocation4], 4294966272  ;;  %v39_v0 = vld [vmem:[%s358_s0] sm:$0xff]  ;;  %v40_v1 = vld [vmem:[%s358_s0 + $0x8] sm:$0xff]  ;;  %v293_v5 = vmov 0.0   ;;  %vm294_vm0 = vmmov 0  }
  0x13   :  { %41 = vadd.xlane.f32.xlu0 %v39_v0  ;;  %v47_v2 = vmul.f32 %v39_v0, %v39_v0  ;;  %v48_v3 = vmul.f32 %v40_v1, %v40_v1  ;;  %v254_v4 = vld [vmem:[#allocation3] sm:$0xff]   ;;  %229 = vmatprep.subr.bf16.mxu0 %v293_v5  ;;  %v255_v6 = vld [vmem:[#allocation3 + $0x8] sm:$0xff]   ;;  %v256_v7 = vld [vmem:[#allocation3 + $0x10] sm:$0xff]  }
  0x14   :  { %230 = vmatpush3.bf16.msra.mxu0 %v254_v4  ;;  %v257_v8 = vld [vmem:[#allocation3 + $0x18] sm:$0xff]   ;;  %v258_v9 = vld [vmem:[#allocation3 + $0x20] sm:$0xff]   ;;  %245 = vmatprep.mubr.msk.bf16.mxu0 %vm294_vm0, %v293_v5  ;;  %v259_v10 = vld [vmem:[#allocation3 + $0x28] sm:$0xff]  }
  0x15   :  { %49 = vadd.xlane.f32.xlu1 %v47_v2  ;;  %231 = vmatprep.subr.bf16.mxu0 %v293_v5  ;;  %v260_v11 = vld [vmem:[#allocation3 + $0x30] sm:$0xff]   ;;  %v261_v12 = vld [vmem:[#allocation3 + $0x38] sm:$0xff]   ;;  %v209_v32 = vld [vmem:[%s359_s1] ss:$0 sm:$0xff] }
  0x16   :  { %v210_v37 = vld [vmem:[%s360_s2] ss:$0 sm:$0xff] }
  0x17   :  { %43 = vadd.xlane.f32.xlu0 %v40_v1  ;;  %v211_v42 = vld [vmem:[%s362_s4] ss:$0 sm:$0xff] }
  0x18   :  { %232 = vmatpush3.bf16.msra.mxu0 %v255_v6 }
  0x19   :  { %51 = vadd.xlane.f32.xlu1 %v48_v3  ;;  %233 = vmatprep.subr.bf16.mxu0 %v293_v5 }
  0x1c   :  { %234 = vmatpush3.bf16.msra.mxu0 %v256_v7 }
  0x1d   :  { %235 = vmatprep.subr.bf16.mxu0 %v293_v5 }
  0x20   :  { %236 = vmatpush3.bf16.msra.mxu0 %v257_v8 }
  0x21   :  { %237 = vmatprep.subr.bf16.mxu0 %v293_v5 }
  0x24   :  { %238 = vmatpush3.bf16.msra.mxu0 %v258_v9 }
  0x25   :  { %239 = vmatprep.subr.bf16.mxu0 %v293_v5 }
  0x28   :  { %240 = vmatpush3.bf16.msra.mxu0 %v259_v10 }
  0x29   :  { %241 = vmatprep.subr.bf16.mxu0 %v293_v5 }
  0x2c   :  { %242 = vmatpush3.bf16.msra.mxu0 %v260_v11 }
  0x2d   :  { %243 = vmatprep.subr.bf16.mxu0 %v293_v5 }
  0x30   :  { %244 = vmatpush3.bf16.msra.mxu0 %v261_v12 }
  0xa0   :  { %v42_v13 = vpop.xlane.xlu0 %41 }
  0xa1   :  { %v45_v14 = vmul.f32 0.03125, %v42_v13 }
  0xa2   :  { %v50_v15 = vpop.xlane.xlu1 %49 }
  0xa3   :  { %v55_v16 = vmul.f32 %v45_v14, %v45_v14  ;;  %v53_v17 = vmul.f32 0.03125, %v50_v15  ;;  %v65_v29 = vsub.f32 %v39_v0, %v45_v14 }
  0xa4   :  { %v44_v18 = vpop.xlane.xlu0 %43 }
  0xa5   :  { %v57_v19 = vsub.f32 %v53_v17, %v55_v16  ;;  %v46_v20 = vmul.f32 0.03125, %v44_v18 }
  0xa6   :  { %v52_v21 = vpop.xlane.xlu1 %51 }
  0xa7   :  { %v59_v22 = vmax.f32 %v57_v19, 0.0  ;;  %v56_v23 = vmul.f32 %v46_v20, %v46_v20  ;;  %v54_v24 = vmul.f32 0.03125, %v52_v21  ;;  %v66_v33 = vsub.f32 %v40_v1, %v46_v20 }
  0xa9   :  { %v61_v25 = vadd.f32 1e-05, %v59_v22  ;;  %v58_v26 = vsub.f32 %v54_v24, %v56_v23 }
  0xab   :  { %262 = vrsqrt.f32 %v61_v25  ;;  %v60_v27 = vmax.f32 %v58_v26, 0.0 }
  0xad   :  { %v62_v28 = vadd.f32 1e-05, %v60_v27 }
  0xaf   :  { %264 = vrsqrt.f32 %v62_v28 }
  0xb5   :  { %v263_v30 = vpop.eup %262 }
  0xb6   :  { %v67_v31 = vmul.f32 %v263_v30, %v65_v29 }
  0xb8   :  { %v76_v36 = vmul.f32 %v209_v32, %v67_v31 }
  0xb9   :  { %v265_v34 = vpop.eup %264 }
  0xba   :  { %v68_v35 = vmul.f32 %v265_v34, %v66_v33  ;;  %v85_v39 = vadd.f32 %v210_v37, %v76_v36 }
  0xbc   :  { %v77_v38 = vmul.f32 %v209_v32, %v68_v35 }
  0xbe   :  { %v86_v40 = vadd.f32 %v210_v37, %v77_v38 }
  0xc0   :  { %v87_v41 = vpack.c.bf16 %v86_v40, %v85_v39 }
  0xc2   :  { %246 = vmatmul.mubr.bf16.vlgmr.msra.gmra.mrb[0].mxu0 %v87_v41 }
 0x195   :  { %v195_v43 = vpop.f32.mrb[0].mxu0 }
 0x196   :  { %v196_v44 = vadd.f32 %v211_v42, %v195_v43  ;;  %v247_v45 = vpop.f32.mrb[1].mxu0 }
 0x197   :  { %v198_v46 = vpop.f32.mrb[2].mxu0 }
 0x198   :  { %202 = vst [vmem:[%s363_s5] sm:$0xff] %v196_v44  ;;  %v199_v47 = vadd.f32 %v211_v42, %v198_v46  ;;  %v248_v48 = vpop.f32.mrb[3].mxu0 }
 0x19a   :  { %203 = vst [vmem:[%s363_s5 + $0x8] sm:$0xff] %v199_v47 }
 0x19b   :  { %208 = vsyncpa [#allocation4], 1 }

</bundles_post_ra>
